<compile_context>
chip_gen: v7x
topology: tpu7x:2x2x1
jax: 0.10.0
libtpu: 0.0.40
codegen_flags: <defaults>
</compile_context>

<pallas_src>
import functools

import jax
import jax.numpy as jnp
from jax.experimental import pallas as pl
from jax.experimental.pallas import tpu as pltpu

_MIB = 1024 * 1024
_SUB = 8  # native f32 sublane depth


def _largest_aligned_divisor(dim, align, cap):
    """Largest multiple of `align` that divides `dim` and is <= cap (or None)."""
    best = None
    t = align
    limit = min(dim, cap)
    while t <= limit:
        if dim % t == 0:
            best = t
        t += align
    return best


def _sublane_align(dtype):
    """Second-minor block-dim alignment required for this dtype's packing."""
    return {1: 32, 2: 16, 4: 8}.get(jnp.dtype(dtype).itemsize, 8)


def _tpu_config():
    """Returns (vmem_limit_bytes, per-block byte budget, tensorcores/chip)."""
    vmem_cap = 64 * _MIB        # conservative default (v7x per-TC)
    num_cores = 1
    try:
        info = pltpu.get_tpu_info()
        vmem_cap = int(getattr(info, "vmem_capacity_bytes", vmem_cap))
        for attr in ("num_tensorcores", "tensorcores_per_chip", "num_cores"):
            v = getattr(info, attr, None)
            if isinstance(v, int) and v > 0:
                num_cores = v
                break
    except Exception:
        pass
    try:  # guard against per-chip (not per-core) reporting on 2-TC parts
        kind = jax.devices()[0].device_kind.lower()
        if "v7" in kind or "7x" in kind:
            vmem_cap = min(vmem_cap, 64 * _MIB)
            num_cores = max(num_cores, 2)
    except Exception:
        pass
    if vmem_cap >= 96 * _MIB:
        # v5e / v6e: 128 MiB physical VMEM -> big blocks approach HBM roofline.
        return 96 * _MIB, 12 * _MIB, num_cores
    # v7x (64 MiB per TC) or unknown: keep compiler headroom, small blocks.
    return 44 * _MIB, 3 * _MIB, num_cores


def _choose_tiles(N, W, H, w_align, budget_bytes, num_cores):
    # Lane dim (H): prefer the full extent (contiguous per-class DMA slabs);
    # on multi-TensorCore chips prefer a 128-aligned split so the "parallel"
    # leading grid axis has >= num_cores tiles.
    th = None
    if num_cores > 1:
        cand = _largest_aligned_divisor(H, 128, cap=max(128, H // num_cores))
        if cand is not None and cand < H:
            th = cand
    if th is None:
        if N * _SUB * H * 4 <= budget_bytes:
            th = H
        else:
            th = _largest_aligned_divisor(
                H, 128, cap=max(128, budget_bytes // (N * _SUB * 4))) or H
    # W tile: keep the f32 logits working block (N * tw * th * 4B) within the
    # budget so double-buffered inputs + elementwise temps fit VMEM.
    cap_w = max(w_align, budget_bytes // max(1, N * th * 4))
    tw = _largest_aligned_divisor(W, w_align, cap=cap_w) or W
    return tw, th


def _validate_tiles(W, H, tw, th, w_align):
    assert W % tw == 0, f"W tile {tw} must divide W={W}"
    assert H % th == 0, f"H tile {th} must divide H={H}"
    assert tw == W or tw % w_align == 0, (
        f"W tile {tw} must be a multiple of {w_align} or the full W extent")
    assert th == H or th % 128 == 0, (
        f"H tile {th} must be a multiple of 128 or the full H extent")


def _dice_loss_kernel(logits_ref, labels_ref, loss_ref, inter_acc, sum_acc,
                      *, smooth):
    # grid = (h ["parallel"], b ["arbitrary"], w ["arbitrary"]); b/w are the
    # reduction axes (dims (0, 2) of the reference reduction).
    b = pl.program_id(1)
    w = pl.program_id(2)
    is_first = jnp.logical_and(b == 0, w == 0)
    is_last = jnp.logical_and(b == pl.num_programs(1) - 1,
                              w == pl.num_programs(2) - 1)

    @pl.when(is_first)
    def _():
        inter_acc[...] = jnp.zeros_like(inter_acc)
        sum_acc[...] = jnp.zeros_like(sum_acc)

    # Narrow (bf16 logits, int8/int16 labels) HBM inputs are upcast only here,
    # after the DMA, so HBM traffic stays narrow.
    x = logits_ref[0].astype(jnp.float32)       # (N, tw, th)
    lbl = labels_ref[0].astype(jnp.int32)       # (tw, th)
    n, tw, th = x.shape

    # ---- softmax over the class axis (axis 0), numerically stable ---------
    m = jnp.max(x, axis=0, keepdims=True)       # (1, tw, th)
    e = jnp.exp(x - m)                          # (N, tw, th)  (EUP)
    denom = jnp.sum(e, axis=0, keepdims=True)   # (1, tw, th)
    # One reciprocal per pixel + N multiplies instead of N per-pixel divides.
    inv = pl.reciprocal(denom, approx=False)    # exact: keep 1e-5 parity
    probs = e * inv                             # (N, tw, th)

    # ---- one-hot as a boolean mask; never materialized as a full f32 tensor
    class_ids = jax.lax.broadcasted_iota(jnp.int32, probs.shape, 0)
    mask = lbl[None, :, :] == class_ids         # bool (N, tw, th)

    inter_t = jnp.where(mask, probs, 0.0)
    # Fused summation term: sum(probs + one_hot) == sum(where(mask, p+1, p)),
    # one reduction instead of two.
    sum_t = jnp.where(mask, probs + 1.0, probs)

    sub = inter_acc.shape[1]
    if sub > 1:
        # Deferred sublane reduction: fold the W tile with elementwise adds of
        # sublane-aligned 8-row chunks (no cross-sublane/XLU work here); the
        # cross-sublane collapse happens once per H tile in the finalize step.
        inter_part = inter_t[:, :sub, :]
        sum_part = sum_t[:, :sub, :]
        for c in range(1, tw // sub):
            s = c * sub
            inter_part = inter_part + inter_t[:, s:s + sub, :]
            sum_part = sum_part + sum_t[:, s:s + sub, :]
        inter_acc[...] += inter_part
        sum_acc[...] += sum_part
    else:
        inter_acc[...] += jnp.sum(inter_t, axis=1, keepdims=True)
        sum_acc[...] += jnp.sum(sum_t, axis=1, keepdims=True)

    @pl.when(is_last)
    def _():
        inter = jnp.sum(inter_acc[...], axis=1)      # (N, th)
        summ = jnp.sum(sum_acc[...], axis=1)         # (N, th)
        inv_s = pl.reciprocal(summ + smooth, approx=False)
        loss_ref[...] = 1.0 - (2.0 * inter + smooth) * inv_s


def dice_loss(logits, labels, smooth: float = 1e-9, reduction: str = "mean",
              tile_w: int | None = None, tile_h: int | None = None):
    """logits: (B, N, W, H) float (f32 or bf16); labels: (B, W, H) int

    Labels are DMA'd in their native dtype (int8/int16/int32 all supported) —
    pass them narrow to save HBM bandwidth.  For bf16 logits, cast in the
    producing op (not a wrapper) so the kernel's HBM read is actually bf16.
    """
    assert reduction in ("none", "sum", "mean"), f"bad reduction {reduction}"
    B, N, W, H = logits.shape
    assert labels.shape == (B, W, H), (labels.shape, (B, W, H))
    assert jnp.issubdtype(labels.dtype, jnp.integer)

    vmem_limit, budget, num_cores = _tpu_config()
    w_align = max(8, _sublane_align(logits.dtype), _sublane_align(labels.dtype))

    tw_auto, th_auto = _choose_tiles(N, W, H, w_align, budget, num_cores)
    tw = tile_w if tile_w is not None else tw_auto
    th = tile_h if tile_h is not None else th_auto
    _validate_tiles(W, H, tw, th, w_align)

    grid = (H // th, B, W // tw)  # (parallel, arbitrary, arbitrary)
    sub = _SUB if tw % _SUB == 0 else 1

    kernel = functools.partial(_dice_loss_kernel, smooth=float(smooth))

    in_specs = [
        pl.BlockSpec((1, N, tw, th), lambda h, b, w: (b, 0, w, h)),
        pl.BlockSpec((1, tw, th), lambda h, b, w: (b, w, h)),
    ]
    out_specs = pl.BlockSpec((N, th), lambda h, b, w: (0, h))
    out_shape = jax.ShapeDtypeStruct((N, H), jnp.float32)

    bytes_accessed = (logits.size * logits.dtype.itemsize
                      + labels.size * labels.dtype.itemsize
                      + N * H * 4)
    loss_map = pl.pallas_call(
        kernel,
        out_shape=out_shape,
        grid=grid,
        in_specs=in_specs,
        out_specs=out_specs,
        scratch_shapes=[
            pltpu.VMEM((N, sub, th), jnp.float32),   # intersection partials
            pltpu.VMEM((N, sub, th), jnp.float32),   # summation partials
        ],
        compiler_params=pltpu.CompilerParams(
            dimension_semantics=("parallel", "arbitrary", "arbitrary"),
            vmem_limit_bytes=vmem_limit,
        ),
        cost_estimate=pl.CostEstimate(
            flops=10 * B * N * W * H,
            transcendentals=B * N * W * H,
            bytes_accessed=bytes_accessed,
        ),
    )(logits, labels)

    if reduction == "none":
        return loss_map
    if reduction == "mean":
        return jnp.mean(loss_map)
    return jnp.sum(loss_map)


def _dice_loss_reference(logits, labels, smooth=1e-9, reduction="mean"):
    """Pure-JAX mirror of the PyTorch forward (for verification)."""
    num_classes = logits.shape[1]
    probs = jax.nn.softmax(logits.astype(jnp.float32), axis=1)
    one_hot = jax.nn.one_hot(labels, num_classes, axis=1, dtype=jnp.float32)
    dims = (0, 2)  # (0,) + range(2, labels.ndim) with labels.ndim == 3
    intersection = jnp.sum(probs * one_hot, axis=dims)
    summation = jnp.sum(probs + one_hot, axis=dims)
    loss = 1.0 - (2.0 * intersection + smooth) / (summation + smooth)
    if reduction == "none":
        return loss
    if reduction == "mean":
        return jnp.mean(loss)
    return jnp.sum(loss)


if __name__ == "__main__":
    B, N, W, H = 2, 4, 16, 16
    key = jax.random.PRNGKey(0)
    k_logits, k_labels = jax.random.split(key)

    logits = jax.random.normal(k_logits, (B, N, W, H), dtype=jnp.float32)
    # Narrow labels go straight to the kernel (no int32 widening in the wrapper).
    labels = jax.random.randint(
        k_labels, (B, W, H), 0, N, dtype=jnp.int32).astype(jnp.int8)

    # Default reduction='mean' (auto tiles at this shape -> grid (1, 2, 1)):
    # exercises the batch-axis accumulation and the deferred-sublane path.
    loss = dice_loss(logits, labels)
    jax.block_until_ready(loss)
    ref = _dice_loss_reference(logits, labels)
    assert jnp.allclose(loss, ref, atol=1e-5, rtol=1e-5), (loss, ref)

    # 'none' reduction: per-(class, H) loss map.
    loss_map = dice_loss(logits, labels, reduction="none")
    jax.block_until_ready(loss_map)
    ref_map = _dice_loss_reference(logits, labels, reduction="none")
    assert jnp.allclose(loss_map, ref_map, atol=1e-5, rtol=1e-5)

    # 'sum' reduction with forced W tiling (int32 labels so the 8-wide W tile
    # is legal) -> grid (1, 2, 2): exercises the multi-step W accumulation.
    labels32 = labels.astype(jnp.int32)
    loss_sum = dice_loss(logits, labels32, reduction="sum", tile_w=8)
    jax.block_until_ready(loss_sum)
    ref_sum = _dice_loss_reference(logits, labels32, reduction="sum")
    assert jnp.allclose(loss_sum, ref_sum, atol=1e-5, rtol=1e-5), (loss_sum, ref_sum)

    # bf16 logits path (upcast happens in-kernel, after the DMA).
    logits_bf16 = logits.astype(jnp.bfloat16)
    loss_bf16 = dice_loss(logits_bf16, labels)
    jax.block_until_ready(loss_bf16)
    ref_bf16 = _dice_loss_reference(logits_bf16, labels)
    assert jnp.allclose(loss_bf16, ref_bf16, atol=1e-4, rtol=1e-4), (loss_bf16, ref_bf16)

    print("KERNEL_OK")
</pallas_src>

<mosaic_0001>
module attributes {stable_mosaic.version = 11 : i64} {
  func.func @_dice_loss_kernel(%arg0: i32, %arg1: i32, %arg2: i32, %arg3: memref<1x4x16x16xf32, #tpu.memory_space<vmem>>, %arg4: memref<1x16x16xi8, #tpu.memory_space<vmem>>, %arg5: memref<4x16xf32, #tpu.memory_space<vmem>>, %arg6: memref<4x8x16xf32, #tpu.memory_space<vmem>>, %arg7: memref<4x8x16xf32, #tpu.memory_space<vmem>>) attributes {dimension_semantics = [#tpu.dimension_semantics<parallel>, #tpu.dimension_semantics<arbitrary>, #tpu.dimension_semantics<arbitrary>], iteration_bounds = array<i64: 1, 2, 1>, scalar_prefetch = 0 : i64, scratch_operands = 2 : i64, tpu.core_type = #tpu.core_type<tc>, window_params = [{transform_indices = @transform_0, window_bounds = array<i64: 1, 4, 16, 16>}, {transform_indices = @transform_1, window_bounds = array<i64: 1, 16, 16>}, {transform_indices = @transform_2, window_bounds = array<i64: 4, 16>}]} {
    %c0_i32 = arith.constant 0 : i32
    %0 = arith.cmpi eq, %arg1, %c0_i32 : i32
    %c0_i32_0 = arith.constant 0 : i32
    %1 = arith.cmpi eq, %arg2, %c0_i32_0 : i32
    %2 = arith.andi %0, %1 : i1
    %c1_i32 = arith.constant 1 : i32
    %3 = arith.cmpi eq, %arg1, %c1_i32 : i32
    %c0_i32_1 = arith.constant 0 : i32
    %4 = arith.cmpi eq, %arg2, %c0_i32_1 : i32
    %5 = arith.andi %3, %4 : i1
    %6 = arith.extui %2 : i1 to i32
    %c0_i32_2 = arith.constant 0 : i32
    %7 = arith.cmpi ne, %6, %c0_i32_2 : i32
    scf.if %7 {
      %cst_25 = arith.constant 0.000000e+00 : f32
      %46 = vector.broadcast %cst_25 : f32 to vector<4x8x16xf32>
      %c0_26 = arith.constant 0 : index
      %c0_27 = arith.constant 0 : index
      %c0_28 = arith.constant 0 : index
      %47 = vector.load %arg6[%c0_26, %c0_27, %c0_28] : memref<4x8x16xf32, #tpu.memory_space<vmem>>, vector<4x8x16xf32>
      tpu.vector_store %arg6[%c0_26, %c0_27, %c0_28], %46 {strides = array<i32>} : memref<4x8x16xf32, #tpu.memory_space<vmem>>, vector<4x8x16xf32>,
      %cst_29 = arith.constant 0.000000e+00 : f32
      %48 = vector.broadcast %cst_29 : f32 to vector<4x8x16xf32>
      %c0_30 = arith.constant 0 : index
      %c0_31 = arith.constant 0 : index
      %c0_32 = arith.constant 0 : index
      %49 = vector.load %arg7[%c0_30, %c0_31, %c0_32] : memref<4x8x16xf32, #tpu.memory_space<vmem>>, vector<4x8x16xf32>
      tpu.vector_store %arg7[%c0_30, %c0_31, %c0_32], %48 {strides = array<i32>} : memref<4x8x16xf32, #tpu.memory_space<vmem>>, vector<4x8x16xf32>,
    } else {
    }
    %c0 = arith.constant 0 : index
    %c0_3 = arith.constant 0 : index
    %c0_4 = arith.constant 0 : index
    %c0_5 = arith.constant 0 : index
    %8 = vector.load %arg3[%c0, %c0_3, %c0_4, %c0_5] : memref<1x4x16x16xf32, #tpu.memory_space<vmem>>, vector<1x4x16x16xf32>
    %9 = vector.shape_cast %8 : vector<1x4x16x16xf32> to vector<4x16x16xf32>
    %c0_6 = arith.constant 0 : index
    %c0_7 = arith.constant 0 : index
    %c0_8 = arith.constant 0 : index
    %10 = vector.load %arg4[%c0_6, %c0_7, %c0_8] : memref<1x16x16xi8, #tpu.memory_space<vmem>>, vector<1x16x16xi8>
    %11 = vector.shape_cast %10 : vector<1x16x16xi8> to vector<16x16xi8>
    %12 = arith.extsi %11 : vector<16x16xi8> to vector<16x16xi32>
    %cst = arith.constant dense<0xFF800000> : vector<16x16xf32>
    %13 = vector.multi_reduction <maximumf>, %9, %cst [0] : vector<4x16x16xf32> to vector<16x16xf32>
    %14 = vector.shape_cast %13 : vector<16x16xf32> to vector<1x16x16xf32>
    %15 = vector.broadcast %14 : vector<1x16x16xf32> to vector<4x16x16xf32>
    %16 = arith.subf %9, %15 : vector<4x16x16xf32>
    %17 = math.exp %16 : vector<4x16x16xf32>
    %cst_9 = arith.constant dense<0.000000e+00> : vector<16x16xf32>
    %18 = vector.multi_reduction <add>, %17, %cst_9 [0] : vector<4x16x16xf32> to vector<16x16xf32>
    %19 = vector.shape_cast %18 : vector<16x16xf32> to vector<1x16x16xf32>
    %20 = tpu.reciprocal %19 : vector<1x16x16xf32> -> vector<1x16x16xf32>
    %21 = vector.broadcast %20 : vector<1x16x16xf32> to vector<4x16x16xf32>
    %22 = arith.mulf %17, %21 : vector<4x16x16xf32>
    %23 = tpu.iota {dimensions = array<i32: 0>} : vector<4x16x16xi32>
    %24 = vector.shape_cast %12 : vector<16x16xi32> to vector<1x16x16xi32>
    %25 = vector.broadcast %24 : vector<1x16x16xi32> to vector<4x16x16xi32>
    %26 = arith.cmpi eq, %25, %23 : vector<4x16x16xi32>
    %cst_10 = arith.constant 0.000000e+00 : f32
    %27 = vector.broadcast %cst_10 : f32 to vector<4x16x16xf32>
    %28 = arith.select %26, %22, %27 : vector<4x16x16xi1>, vector<4x16x16xf32>
    %cst_11 = arith.constant 1.000000e+00 : f32
    %29 = vector.broadcast %cst_11 : f32 to vector<4x16x16xf32>
    %30 = arith.addf %22, %29 : vector<4x16x16xf32>
    %31 = arith.select %26, %30, %22 : vector<4x16x16xi1>, vector<4x16x16xf32>
    %32 = vector.extract_strided_slice %28 {offsets = [0, 0, 0], sizes = [4, 8, 16], strides = [1, 1, 1]} : vector<4x16x16xf32> to vector<4x8x16xf32>
    %33 = vector.extract_strided_slice %31 {offsets = [0, 0, 0], sizes = [4, 8, 16], strides = [1, 1, 1]} : vector<4x16x16xf32> to vector<4x8x16xf32>
    %34 = vector.extract_strided_slice %28 {offsets = [0, 8, 0], sizes = [4, 8, 16], strides = [1, 1, 1]} : vector<4x16x16xf32> to vector<4x8x16xf32>
    %35 = arith.addf %32, %34 : vector<4x8x16xf32>
    %36 = vector.extract_strided_slice %31 {offsets = [0, 8, 0], sizes = [4, 8, 16], strides = [1, 1, 1]} : vector<4x16x16xf32> to vector<4x8x16xf32>
    %37 = arith.addf %33, %36 : vector<4x8x16xf32>
    %c0_12 = arith.constant 0 : index
    %c0_13 = arith.constant 0 : index
    %c0_14 = arith.constant 0 : index
    %38 = vector.load %arg6[%c0_12, %c0_13, %c0_14] : memref<4x8x16xf32, #tpu.memory_space<vmem>>, vector<4x8x16xf32>
    %39 = arith.addf %38, %35 : vector<4x8x16xf32>
    %c0_15 = arith.constant 0 : index
    %c0_16 = arith.constant 0 : index
    %c0_17 = arith.constant 0 : index
    %40 = vector.load %arg6[%c0_15, %c0_16, %c0_17] : memref<4x8x16xf32, #tpu.memory_space<vmem>>, vector<4x8x16xf32>
    tpu.vector_store %arg6[%c0_15, %c0_16, %c0_17], %39 {strides = array<i32>} : memref<4x8x16xf32, #tpu.memory_space<vmem>>, vector<4x8x16xf32>,
    %c0_18 = arith.constant 0 : index
    %c0_19 = arith.constant 0 : index
    %c0_20 = arith.constant 0 : index
    %41 = vector.load %arg7[%c0_18, %c0_19, %c0_20] : memref<4x8x16xf32, #tpu.memory_space<vmem>>, vector<4x8x16xf32>
    %42 = arith.addf %41, %37 : vector<4x8x16xf32>
    %c0_21 = arith.constant 0 : index
    %c0_22 = arith.constant 0 : index
    %c0_23 = arith.constant 0 : index
    %43 = vector.load %arg7[%c0_21, %c0_22, %c0_23] : memref<4x8x16xf32, #tpu.memory_space<vmem>>, vector<4x8x16xf32>
    tpu.vector_store %arg7[%c0_21, %c0_22, %c0_23], %42 {strides = array<i32>} : memref<4x8x16xf32, #tpu.memory_space<vmem>>, vector<4x8x16xf32>,
    %44 = arith.extui %5 : i1 to i32
    %c0_i32_24 = arith.constant 0 : i32
    %45 = arith.cmpi ne, %44, %c0_i32_24 : i32
    scf.if %45 {
      %c0_25 = arith.constant 0 : index
      %c0_26 = arith.constant 0 : index
      %c0_27 = arith.constant 0 : index
      %46 = vector.load %arg6[%c0_25, %c0_26, %c0_27] : memref<4x8x16xf32, #tpu.memory_space<vmem>>, vector<4x8x16xf32>
      %cst_28 = arith.constant dense<0.000000e+00> : vector<4x16xf32>
      %47 = vector.multi_reduction <add>, %46, %cst_28 [1] : vector<4x8x16xf32> to vector<4x16xf32>
      %c0_29 = arith.constant 0 : index
      %c0_30 = arith.constant 0 : index
      %c0_31 = arith.constant 0 : index
      %48 = vector.load %arg7[%c0_29, %c0_30, %c0_31] : memref<4x8x16xf32, #tpu.memory_space<vmem>>, vector<4x8x16xf32>
      %cst_32 = arith.constant dense<0.000000e+00> : vector<4x16xf32>
      %49 = vector.multi_reduction <add>, %48, %cst_32 [1] : vector<4x8x16xf32> to vector<4x16xf32>
      %cst_33 = arith.constant 9.99999971E-10 : f32
      %50 = vector.broadcast %cst_33 : f32 to vector<4x16xf32>
      %51 = arith.addf %49, %50 : vector<4x16xf32>
      %52 = tpu.reciprocal %51 : vector<4x16xf32> -> vector<4x16xf32>
      %cst_34 = arith.constant 2.000000e+00 : f32
      %53 = vector.broadcast %cst_34 : f32 to vector<4x16xf32>
      %54 = arith.mulf %53, %47 : vector<4x16xf32>
      %cst_35 = arith.constant 9.99999971E-10 : f32
      %55 = vector.broadcast %cst_35 : f32 to vector<4x16xf32>
      %56 = arith.addf %54, %55 : vector<4x16xf32>
      %57 = arith.mulf %56, %52 : vector<4x16xf32>
      %cst_36 = arith.constant 1.000000e+00 : f32
      %58 = vector.broadcast %cst_36 : f32 to vector<4x16xf32>
      %59 = arith.subf %58, %57 : vector<4x16xf32>
      %c0_37 = arith.constant 0 : index
      %c0_38 = arith.constant 0 : index
      %60 = vector.load %arg5[%c0_37, %c0_38] : memref<4x16xf32, #tpu.memory_space<vmem>>, vector<4x16xf32>
      tpu.vector_store %arg5[%c0_37, %c0_38], %59 {strides = array<i32>} : memref<4x16xf32, #tpu.memory_space<vmem>>, vector<4x16xf32>,
    } else {
    }
    return
  }
  func.func @transform_0(%arg0: i32, %arg1: i32, %arg2: i32) -> (i32, i32, i32, i32) {
    %c0_i32 = arith.constant 0 : i32
    %c0_i32_0 = arith.constant 0 : i32
    return %arg1, %c0_i32, %arg2, %arg0 : i32, i32, i32, i32
  }
  func.func @transform_1(%arg0: i32, %arg1: i32, %arg2: i32) -> (i32, i32, i32) {
    %c0_i32 = arith.constant 0 : i32
    return %arg1, %arg2, %arg0 : i32, i32, i32
  }
  func.func @transform_2(%arg0: i32, %arg1: i32, %arg2: i32) -> (i32, i32) {
    %c0_i32 = arith.constant 0 : i32
    %c0_i32_0 = arith.constant 0 : i32
    return %c0_i32, %arg0 : i32, i32
  }
}

</mosaic_0001>

<bundles_post_ra>
// kernel: tpu_custom_call.1
= control target key start
LH: loop header
LB: loop body
LE: loop exit
PB: predicated region body
PF: predicated region fallthrough
CT: control target
= control target key end

     0   :  { %7 = vsyncpa [#allocation5], 0  ;;  %s1179_s0 = inlined_call_operand.hbm [shape: f32[2,4,16,16], index: 0, kind: input, shape index: {}]   ;;  %s1180_s1 = inlined_call_operand.hbm [shape: s8[2,16,16], index: 1, kind: input, shape index: {}]   ;;  %s1181_s2 = inlined_call_operand.hbm [shape: f32[4,16], index: 2, kind: output, shape index: {}]  }
   0x1   :  { %9 = vsyncpa [#allocation5 + $0x1], 0 }
   0x2   :  { %10 = vsyncpa [#allocation8], 0 }
   0x3   :  { %12 = vsyncpa [#allocation8 + $0x1], 0 }
   0x4   :  { %13 = vsyncpa [#allocation6], 0  ;;  %s889_s9 = smov 0   ;;  %s891_s10 = smov 0  }
   0x5   :  { %s893_s11 = smov 0   ;;  %s895_s12 = smov 0  }
   0x6   :  { %s897_s13 = smov 0   ;;  %s899_s14 = smov 0  }
   0x7 LB: > { %s594_s15 = sadd.s32 4294967295, %s864_s14   ;;  %s34_s16 = sadd.s32 1, %s860_s13  ;;  %s864_s14 = sphi %s899_s14, %s19_s14   ;;  %s860_s13 = sphi %s897_s13, %s1193_s13   ;;  %s856_s12 = sphi %s895_s12, %s1192_s12   ;;  %s852_s11 = sphi %s893_s11, %s1191_s11   ;;  %s848_s10 = sphi %s891_s10, %s1190_s10   ;;  %s844_s9 = sphi %s889_s9, %s1189_s9  }
   0x8   : > { %p36_p0 = scmp.ge.s32.totalorder %s34_s16, 2  ;;  %s49_s17 = sadd.s32 1, %s852_s11 }
   0x9   : > { %p56_p1 = scmp.ne.s32.totalorder %s852_s11, %s848_s10  ;;  %p57_p2 = scmp.eq.s32.totalorder %s864_s14, 0 }
   0xa   : > { %s1195_s16 = smov (%p36_p0, %s34_s16), 0  ;;  %p62_p4 = scmp.ne.s32.totalorder %s848_s10, %s844_s9 }
   0xb   : > { %p925_p3 = por %p57_p2, %p56_p1  ;;  %s42_s19 = ssub.s32 %s860_s13, %s1195_s16 }
   0xc   : > { %p63_p5 = scmp.eq.s32.totalorder %s594_s15, 0  ;;  %p47_p6 = scmp.eq.s32.totalorder %s42_s19, 0 }
   0xd   : > { %p635_p8 = scmp.lt.s32.totalorder %s864_s14, 2  ;;  %s943_s22 = sand.u32 1, %s852_s11  }
   0xe   : > { %p934_p7 = por %p63_p5, %p62_p4  ;;  %s612_s23 = sshll.u32 %s860_s13, 10 }
   0xf   : > { %s940_s21 = scalar_select %p47_p6, %s852_s11, %s49_s17  }
  0x10   : > { %s1184_s20 = scalar_select %p934_p7, 1, 0 }
  0x11   : > { %s597_s24 = sshll.u32 %s943_s22, 6  ;;  %s950_s27 = scalar_lea.hbm %s1179_s0, %s612_s23 }
  0x12   : > { %s146_s28 = scalar_lea.vmem [#allocation4], %s597_s24  ;;  %p954_p9 = pnand %p635_p8, %p925_p3 }
  0x13   : > { %s156_s29 = sshll.u32 %s146_s28, 4  ;;  %s143_s3 = scalar_lea.sflag [#allocation5], %s943_s22  ;;  %s958_s29 = int_to_ptr.vmem [resolvable:$true] %s156_s29 }
  0x14   : > { %s720_s4 = scalar_lea.hbm %s950_s27, 1024  ;;  %p722_p11 = pneg %p954_p9 }
  0x15   : > { %p721_p10 = scmp.ne.s32.totalorder %s950_s27, %s720_s4  ;;  %s725_s7 = scalar_lea.hbm %s1179_s0, 2048 }
  0x16   : > { %p726_p0 = scmp.lt.u32.totalorder %s950_s27, %s1179_s0  ;;  %p727_p1 = scmp.lt.u32.totalorder %s725_s7, %s720_s4 }
  0x17   : > { %p723_p12 = pnand %p722_p11, %p721_p10  ;;  %p729_p3 = scmp.lt.u32.totalorder %s720_s4, %s950_s27 }
  0x18   : > { %p728_p2 = por %p727_p1, %p726_p0 }
  0x19   : > { %p724_p13 = pneg %p723_p12 }
  0x1a   : > { %p730_p4 = por %p729_p3, %p728_p2 }
  0x1c   : > { %p731_p5 = pnand %p730_p4, %p724_p13 }
  0x1e   : > { %734 = shalt.err (!%p731_p5)
}
  0x1f   : > { %s735_s17 = scalar_lea.vmem %s958_s29, 1024  ;;  %s866_s18 = smov [#allocation4]  }
  0x20   : > { %p736_p6 = scmp.ne.s32.totalorder %s958_s29, %s735_s17  ;;  %s740_s19 = sshll.u32 %s866_s18, 4  ;;  %s741_s19 = int_to_ptr.vmem [resolvable:$false] %s740_s19 }
  0x21   : > { %s742_s23 = scalar_lea.vmem %s741_s19, 2048  ;;  %p743_p12 = scmp.lt.s32.totalorder %s958_s29, %s741_s19 }
  0x22   : > { %p738_p8 = pnand %p736_p6, %p722_p11  ;;  %p744_p0 = scmp.lt.s32.totalorder %s742_s23, %s735_s17 }
  0x24   : > { %p739_p10 = pneg %p738_p8  ;;  %p745_p1 = por %p744_p0, %p743_p12 }
  0x26   : > { %p746_p2 = pnand %p745_p1, %p739_p10 }
  0x28   : > { %749 = shalt.err (!%p746_p2)
}
  0x29   : > { %s867_s24 = smov 128   ;;  %s868_s25 = smov 8  }
  0x2a   : > { %631 = dma.hbm_to_vmem [thread:$0]  (!%p954_p9), %s950_s27, 1024, %s958_s29, %s143_s3, %s867_s24, %s867_s24, %s868_s25  }
  0x2b   : > { %p603_p13 = scmp.ge.s32.totalorder %s864_s14, 1  ;;  %p188_p3 = scmp.lt.s32.totalorder %s864_s14, 3 }
  0x2c   : > { %s600_s26 = sshll.u32 %s943_s22, 2  ;;  %s613_s4 = sshll.u32 %s860_s13, 6 }
  0x2d   : > { %p991_p4 = pnand %p603_p13, %p188_p3  ;;  %s170_s5 = scalar_lea.vmem [#allocation7], %s600_s26 }
  0x2e   : > { %s180_s6 = sshll.u32 %s170_s5, 4  ;;  %s999_s9 = scalar_lea.hbm %s1180_s1, %s613_s4  ;;  %s1001_s6 = int_to_ptr.vmem [resolvable:$true] %s180_s6 }
  0x2f   : > { %s167_s27 = scalar_lea.sflag [#allocation8], %s943_s22  ;;  %s750_s29 = scalar_lea.hbm %s999_s9, 64 }
  0x30   : > { %p751_p5 = scmp.ne.s32.totalorder %s999_s9, %s750_s29  ;;  %s755_s18 = scalar_lea.hbm %s1180_s1, 128 }
  0x31   : > { %p756_p10 = scmp.lt.u32.totalorder %s999_s9, %s1180_s1  ;;  %p757_p12 = scmp.lt.u32.totalorder %s755_s18, %s750_s29 }
  0x32   : > { %p753_p6 = pnand %p751_p5, %p722_p11  ;;  %p759_p1 = scmp.lt.u32.totalorder %s750_s29, %s999_s9 }
  0x33   : > { %p758_p0 = por %p757_p12, %p756_p10 }
  0x34   : > { %p754_p8 = pneg %p753_p6 }
  0x35   : > { %p760_p2 = por %p759_p1, %p758_p0 }
  0x37   : > { %p761_p13 = pnand %p760_p2, %p754_p8 }
  0x39   : > { %764 = shalt.err (!%p761_p13)
}
  0x3a   : > { %s765_s24 = scalar_lea.vmem %s1001_s6, 64  ;;  %s869_s25 = smov [#allocation7]  }
  0x3b   : > { %p766_p3 = scmp.ne.s32.totalorder %s1001_s6, %s765_s24  ;;  %s770_s26 = sshll.u32 %s869_s25, 4  ;;  %s771_s26 = int_to_ptr.vmem [resolvable:$false] %s770_s26 }
  0x3c   : > { %s772_s4 = scalar_lea.vmem %s771_s26, 128  ;;  %p773_p7 = scmp.lt.s32.totalorder %s1001_s6, %s771_s26 }
  0x3d   : > { %p768_p5 = pnand %p766_p3, %p722_p11  ;;  %p774_p10 = scmp.lt.s32.totalorder %s772_s4, %s765_s24 }
  0x3f   : > { %p769_p6 = pneg %p768_p5  ;;  %p775_p12 = por %p774_p10, %p773_p7 }
  0x41   : > { %p776_p0 = pnand %p775_p12, %p769_p6 }
  0x43   : > { %779 = shalt.err (!%p776_p0)
}
  0x44   : > { %s870_s5 = smov 32   ;;  %s871_s7 = smov 2  }
  0x45   : > { %634 = dma.hbm_to_vmem [thread:$0]  (!%p954_p9), %s999_s9, 64, %s1001_s6, %s167_s27, %s870_s5, %s870_s5, %s871_s7  }
  0x46   : > { %192 = sbr.rel (%p991_p4) target bundleno = 214 (0xd6), region = 28  ;;  %s194_s8 = sand.u32 (!%p991_p4), 1, %s848_s10  }
  0x47   : > { %s604_s29 = sshll.u32 (!%p991_p4), %s194_s8, 6  ;;  %s195_s3 = scalar_lea.sflag (!%p991_p4), [#allocation5], %s194_s8 }
  0x48   : > { %s1032_s17 = scalar_lea.vmem (!%p991_p4), [#allocation4], %s604_s29  ;;  %p1187_p7 = scmp.ne.s32.totalorder (!%p991_p4), %s1184_s20, 0 }
  0x4d   : > { %831 = dma.done.wait (%p1187_p7), %s195_s3, 1024  }
  0x4e   : > { %833 = vsyncadd (%p1187_p7), %s195_s3, 4294966272  ;;  %s605_s18 = sshll.u32 %s194_s8, 2  ;;  %s204_s30 = scalar_lea.sflag [#allocation8], %s194_s8 }
  0x4f   : > { %s1038_s22 = scalar_lea.vmem [#allocation7], %s605_s18 }
  0x50   : > { %835 = dma.done.wait (%p1187_p7), %s204_s30, 64  }
  0x51   : > { %837 = vsyncadd (%p1187_p7), %s204_s30, 4294967232  ;;  %p230_p9 = scmp.eq.s32.totalorder %s856_s12, 0  ;;  %p234_p11 = scmp.eq.s32.totalorder %s856_s12, 1 }
  0x52   : > { %vm239_vm0 = vcmask (%p230_p9), 130048   ;;  %v872_v0 = vmov (%p230_p9), 0.0  }
  0x53   : > { %238 = sbr.rel (!%p230_p9) target bundleno = 90 (0x5a), region = 40  ;;  %240 = vst.msk [vmem:[#allocation2] sm:$0xff] (%p230_p9), %vm239_vm0, %v872_v0  ;;  %241 = vst.msk [vmem:[#allocation2 + $0x8] sm:$0xff] (%p230_p9), %vm239_vm0, %v872_v0 }
  0x54   : > { %242 = vst.msk [vmem:[#allocation2 + $0x10] sm:$0xff] (%p230_p9), %vm239_vm0, %v872_v0  ;;  %243 = vst.msk [vmem:[#allocation2 + $0x18] sm:$0xff] (%p230_p9), %vm239_vm0, %v872_v0 }
  0x55   : > { %244 = vst.msk [vmem:[#allocation3] sm:$0xff] (%p230_p9), %vm239_vm0, %v872_v0  ;;  %245 = vst.msk [vmem:[#allocation3 + $0x8] sm:$0xff] (%p230_p9), %vm239_vm0, %v872_v0 }
  0x56   : > { %246 = vst.msk [vmem:[#allocation3 + $0x10] sm:$0xff] (%p230_p9), %vm239_vm0, %v872_v0  ;;  %247 = vst.msk [vmem:[#allocation3 + $0x18] sm:$0xff] (%p230_p9), %vm239_vm0, %v872_v0 }
  0x5a PF: > { %v248_v1 = vld [vmem:[%s1032_s17] sm:$0xff]  ;;  %v249_v2 = vld [vmem:[%s1032_s17 + $0x8] sm:$0xff]  ;;  %v250_v3 = vld [vmem:[%s1032_s17 + $0x10] sm:$0xff]  ;;  %vm260_vm1 = vcmask 130048   ;;  %vm481_vm10 = vcmask (%p234_p11), 1041409   ;;  %vm483_vm11 = vcmask (%p234_p11), 1042434  }
  0x5b   : > { %v251_v4 = vld [vmem:[%s1032_s17 + $0x18] sm:$0xff]  ;;  %v252_v5 = vld [vmem:[%s1032_s17 + $0x20] sm:$0xff]  ;;  %v253_v6 = vld [vmem:[%s1032_s17 + $0x28] sm:$0xff]  ;;  %v261_v7 = vsel %vm260_vm1, %v248_v1, -inf  ;;  %v262_v8 = vsel %vm260_vm1, %v250_v3, -inf  ;;  %v268_v12 = vsel %vm260_vm1, %v249_v2, -inf }
  0x5c   : > { %v254_v9 = vld [vmem:[%s1032_s17 + $0x30] sm:$0xff]  ;;  %v255_v10 = vld [vmem:[%s1032_s17 + $0x38] sm:$0xff]  ;;  %v263_v11 = vsel %vm260_vm1, %v252_v5, -inf  ;;  %v269_v13 = vsel %vm260_vm1, %v251_v4, -inf  ;;  %v270_v17 = vsel %vm260_vm1, %v253_v6, -inf  ;;  %vm485_vm12 = vcmask (%p234_p11), 1043459  }
  0x5d   : > { %v264_v14 = vmax.f32 %v261_v7, %v263_v11  ;;  %v265_v15 = vsel %vm260_vm1, %v254_v9, -inf  ;;  %v272_v18 = vsel %vm260_vm1, %v255_v10, -inf  ;;  %v271_v19 = vmax.f32 %v268_v12, %v270_v17  ;;  %v617_v61 = vld [vmem:[%s1038_s22] sm:$0xf]  }
  0x5e   : > { %v266_v16 = vmax.f32 %v262_v8, %v265_v15  ;;  %v273_v20 = vmax.f32 %v269_v13, %v272_v18  ;;  %v1071_v62 = vunpack.c.0.s8 %v617_v61  ;;  %v1073_v63 = vunpack.c.1.s8 %v617_v61  ;;  %v363_v11 = vld [vmem:[#allocation2] sm:$0xff]  ;;  %v364_v13 = vld [vmem:[#allocation2 + $0x8] sm:$0xff] }
  0x5f   : > { %vm488_vm13 = vcmask (%p234_p11), 125952  }
  0x60   : > { %v267_v21 = vmax.f32 %v264_v14, %v266_v16  ;;  %v274_v22 = vmax.f32 %v271_v19, %v273_v20  ;;  %vm323_vm2 = vcmp.eq.s32.totalorder %v1071_v62, 0  ;;  %vm324_vm3 = vcmp.eq.s32.totalorder %v1073_v63, 0  ;;  %v365_v19 = vld [vmem:[#allocation2 + $0x10] sm:$0xff] }
  0x61   : > { %vm325_vm4 = vcmp.eq.s32.totalorder %v1071_v62, 1  ;;  %vm326_vm5 = vcmp.eq.s32.totalorder %v1073_v63, 1  ;;  %vm327_vm6 = vcmp.eq.s32.totalorder %v1071_v62, 2  ;;  %vm328_vm7 = vcmp.eq.s32.totalorder %v1073_v63, 2 }
  0x62   : > { %v275_v23 = vsub.f32 %v248_v1, %v267_v21  ;;  %v277_v24 = vsub.f32 %v250_v3, %v267_v21  ;;  %v279_v25 = vsub.f32 %v252_v5, %v267_v21  ;;  %v276_v26 = vsub.f32 %v249_v2, %v274_v22 }
  0x63   : > { %v278_v27 = vsub.f32 %v251_v4, %v274_v22  ;;  %v280_v28 = vsub.f32 %v253_v6, %v274_v22  ;;  %v281_v29 = vsub.f32 %v254_v9, %v267_v21  ;;  %v282_v32 = vsub.f32 %v255_v10, %v274_v22  ;;  %v366_v21 = vld [vmem:[#allocation2 + $0x18] sm:$0xff] }
  0x64   : > { %v283_v30 = vmul.f32 1.442695, %v275_v23  ;;  %v287_v31 = vmul.f32 1.442695, %v277_v24  ;;  %v285_v33 = vmul.f32 1.442695, %v276_v26 }
  0x65   : > { %v289_v34 = vmul.f32 1.442695, %v278_v27  ;;  %v291_v35 = vmul.f32 1.442695, %v279_v25  ;;  %v293_v36 = vmul.f32 1.442695, %v280_v28 }
  0x66   : > { %692 = vpow2.f32 %v283_v30  ;;  %v295_v37 = vmul.f32 1.442695, %v281_v29  ;;  %v297_v38 = vmul.f32 1.442695, %v282_v32  ;;  %vm329_vm8 = vcmp.eq.s32.totalorder %v1071_v62, 3 }
  0x67   : > { %694 = vpow2.f32 %v285_v33  ;;  %vm330_vm9 = vcmp.eq.s32.totalorder %v1073_v63, 3 }
  0x68   : > { %696 = vpow2.f32 %v287_v31 }
  0x69   : > { %698 = vpow2.f32 %v289_v34 }
  0x6a   : > { %700 = vpow2.f32 %v291_v35 }
  0x6b   : > { %702 = vpow2.f32 %v293_v36  ;;  %v375_v36 = vld [vmem:[#allocation3] sm:$0xff] }
  0x6c   : > { %704 = vpow2.f32 %v295_v37 }
  0x6d   : > { %706 = vpow2.f32 %v297_v38 }
  0x70   : > { %v693_v39 = vpop.eup %692 }
  0x71   : > { %v695_v40 = vpop.eup %694  ;;  %v299_v41 = vsel %vm260_vm1, %v693_v39, 0.0 }
  0x72   : > { %v697_v42 = vpop.eup %696  ;;  %v306_v43 = vsel %vm260_vm1, %v695_v40, 0.0 }
  0x73   : > { %v699_v44 = vpop.eup %698  ;;  %v300_v45 = vsel %vm260_vm1, %v697_v42, 0.0 }
  0x74   : > { %v701_v46 = vpop.eup %700  ;;  %v301_v47 = vadd.f32 %v300_v45, %v299_v41  ;;  %v307_v48 = vsel %vm260_vm1, %v699_v44, 0.0 }
  0x75   : > { %v703_v49 = vpop.eup %702  ;;  %v302_v50 = vsel %vm260_vm1, %v701_v46, 0.0  ;;  %v308_v51 = vadd.f32 %v307_v48, %v306_v43 }
  0x76   : > { %v705_v52 = vpop.eup %704  ;;  %v303_v53 = vadd.f32 %v302_v50, %v301_v47  ;;  %v309_v54 = vsel %vm260_vm1, %v703_v49, 0.0  ;;  %v377_v50 = vld [vmem:[#allocation3 + $0x10] sm:$0xff] }
  0x77   : > { %v707_v55 = vpop.eup %706  ;;  %v304_v56 = vsel %vm260_vm1, %v705_v52, 0.0  ;;  %v310_v57 = vadd.f32 %v309_v54, %v308_v51  ;;  %v378_v54 = vld [vmem:[#allocation3 + $0x18] sm:$0xff] }
  0x78   : > { %v305_v58 = vadd.f32 %v304_v56, %v303_v53  ;;  %v311_v59 = vsel %vm260_vm1, %v707_v55, 0.0 }
  0x79   : > { %v312_v60 = vadd.f32 %v311_v59, %v310_v57 }
  0x7a   : > { %708 = vrcp.f32 %v305_v58 }
  0x7b   : > { %710 = vrcp.f32 %v312_v60 }
  0x84   : > { %v709_v0 = vpop.eup %708 }
  0x85   : > { %v711_v1 = vpop.eup %710  ;;  %v315_v2 = vmul.f32 %v709_v0, %v693_v39  ;;  %v317_v3 = vmul.f32 %v709_v0, %v697_v42  ;;  %v319_v4 = vmul.f32 %v709_v0, %v701_v46  ;;  %v321_v5 = vmul.f32 %v709_v0, %v705_v52  ;;  %v376_v39 = vld [vmem:[#allocation3 + $0x8] sm:$0xff] }
  0x86   : > { %v316_v6 = vmul.f32 %v711_v1, %v695_v40  ;;  %v318_v7 = vmul.f32 %v711_v1, %v699_v44  ;;  %v320_v8 = vmul.f32 %v711_v1, %v703_v49  ;;  %v322_v9 = vmul.f32 %v711_v1, %v707_v55 }
  0x87   : > { %v331_v10 = vsel %vm323_vm2, %v315_v2, 0.0  ;;  %v333_v12 = vsel %vm325_vm4, %v317_v3, 0.0  ;;  %v335_v14 = vsel %vm327_vm6, %v319_v4, 0.0  ;;  %v337_v15 = vsel %vm329_vm8, %v321_v5, 0.0 }
  0x88   : > { %v332_v16 = vsel %vm324_vm3, %v316_v6, 0.0  ;;  %v334_v17 = vsel %vm326_vm5, %v318_v7, 0.0  ;;  %v336_v18 = vsel %vm328_vm7, %v320_v8, 0.0  ;;  %v338_v20 = vsel %vm330_vm9, %v322_v9, 0.0 }
  0x89   : > { %v355_v22 = vadd.f32 %v332_v16, %v331_v10  ;;  %v356_v23 = vadd.f32 %v334_v17, %v333_v12  ;;  %v357_v24 = vadd.f32 %v336_v18, %v335_v14  ;;  %v358_v25 = vadd.f32 %v338_v20, %v337_v15 }
  0x8a   : > { %v339_v26 = vadd.f32 1.0, %v315_v2  ;;  %v340_v27 = vadd.f32 1.0, %v316_v6  ;;  %v341_v28 = vadd.f32 1.0, %v317_v3  ;;  %v342_v29 = vadd.f32 1.0, %v318_v7 }
  0x8b   : > { %v367_v30 = vadd.f32 %v363_v11, %v355_v22  ;;  %v368_v31 = vadd.f32 %v364_v13, %v356_v23  ;;  %v369_v32 = vadd.f32 %v365_v19, %v357_v24  ;;  %v370_v33 = vadd.f32 %v366_v21, %v358_v25 }
  0x8c   : > { %v347_v34 = vsel %vm323_vm2, %v339_v26, %v315_v2  ;;  %v348_v35 = vsel %vm324_vm3, %v340_v27, %v316_v6  ;;  %v349_v37 = vsel %vm325_vm4, %v341_v28, %v317_v3  ;;  %v350_v38 = vsel %vm326_vm5, %v342_v29, %v318_v7 }
  0x8d   : > { %371 = vst.msk [vmem:[#allocation2] sm:$0xff] %vm260_vm1, %v367_v30  ;;  %372 = vst.msk [vmem:[#allocation2 + $0x8] sm:$0xff] %vm260_vm1, %v368_v31  ;;  %v359_v40 = vadd.f32 %v348_v35, %v347_v34  ;;  %v360_v41 = vadd.f32 %v350_v38, %v349_v37  ;;  %v343_v42 = vadd.f32 1.0, %v319_v4  ;;  %v344_v43 = vadd.f32 1.0, %v320_v8 }
  0x8e   : > { %373 = vst.msk [vmem:[#allocation2 + $0x10] sm:$0xff] %vm260_vm1, %v369_v32  ;;  %374 = vst.msk [vmem:[#allocation2 + $0x18] sm:$0xff] %vm260_vm1, %v370_v33  ;;  %v345_v44 = vadd.f32 1.0, %v321_v5  ;;  %v346_v45 = vadd.f32 1.0, %v322_v9 }
  0x8f   : > { %v379_v46 = vadd.f32 %v375_v36, %v359_v40  ;;  %v380_v47 = vadd.f32 %v376_v39, %v360_v41  ;;  %v351_v48 = vsel %vm327_vm6, %v343_v42, %v319_v4  ;;  %v352_v49 = vsel %vm328_vm7, %v344_v43, %v320_v8  ;;  %388 = sbr.rel (!%p234_p11) target bundleno = 189 (0xbd), region = 44 }
  0x90   : > { %v361_v51 = vadd.f32 %v352_v49, %v351_v48  ;;  %v353_v52 = vsel %vm329_vm8, %v345_v44, %v321_v5  ;;  %v354_v53 = vsel %vm330_vm9, %v346_v45, %v322_v9 }
  0x91   : > { %383 = vst.msk [vmem:[#allocation3] sm:$0xff] %vm260_vm1, %v379_v46  ;;  %384 = vst.msk [vmem:[#allocation3 + $0x8] sm:$0xff] %vm260_vm1, %v380_v47  ;;  %v362_v55 = vadd.f32 %v354_v53, %v353_v52 }
  0x92   : > { %v381_v56 = vadd.f32 %v377_v50, %v361_v51 }
  0x93   : > { %v382_v57 = vadd.f32 %v378_v54, %v362_v55 }
  0x94   : > { %385 = vst.msk [vmem:[#allocation3 + $0x10] sm:$0xff] %vm260_vm1, %v381_v56  ;;  %v389_v58 = vld [vmem:[#allocation2] sm:$0xff] (%p234_p11)  ;;  %v390_v59 = vld [vmem:[#allocation2 + $0x8] sm:$0xff] (%p234_p11) }
  0x95   : > { %386 = vst.msk [vmem:[#allocation3 + $0x18] sm:$0xff] %vm260_vm1, %v382_v57  ;;  %v391_v60 = vld [vmem:[#allocation2 + $0x10] sm:$0xff] (%p234_p11)  ;;  %v392_v61 = vld [vmem:[#allocation2 + $0x18] sm:$0xff] (%p234_p11)  ;;  %v393_v62 = vsel (%p234_p11), %vm260_vm1, %v389_v58, 0.0  ;;  %v400_v63 = vsel (%p234_p11), %vm260_vm1, %v390_v59, 0.0 }
  0x96   : > { %v407_v0 = vsel %vm260_vm1, %v391_v60, 0.0  ;;  %v394_v3 = vrot.slane %v393_v62, 4  ;;  %v401_v4 = vrot.slane %v400_v63, 4  ;;  %v414_v6 = vsel %vm260_vm1, %v392_v61, 0.0 }
  0x97   : > { %v408_v5 = vrot.slane %v407_v0, 4  ;;  %v415_v9 = vrot.slane %v414_v6, 4 }
  0x98   : > { %v421_v1 = vld [vmem:[#allocation3] sm:$0xff]  ;;  %v422_v2 = vld [vmem:[#allocation3 + $0x8] sm:$0xff]  ;;  %v395_v13 = vadd.f32 %v394_v3, %v393_v62  ;;  %v402_v14 = vadd.f32 %v401_v4, %v400_v63 }
  0x99   : > { %v425_v10 = vsel %vm260_vm1, %v421_v1, 0.0  ;;  %v432_v11 = vsel %vm260_vm1, %v422_v2, 0.0  ;;  %v409_v15 = vadd.f32 %v408_v5, %v407_v0  ;;  %v416_v17 = vadd.f32 %v415_v9, %v414_v6 }
  0x9a   : > { %v426_v16 = vrot.slane %v425_v10, 4  ;;  %v433_v18 = vrot.slane %v432_v11, 4  ;;  %v396_v21 = vrot.slane %v395_v13, 2  ;;  %v403_v22 = vrot.slane %v402_v14, 2 }
  0x9b   : > { %v423_v7 = vld [vmem:[#allocation3 + $0x10] sm:$0xff]  ;;  %v410_v24 = vrot.slane %v409_v15, 2  ;;  %v417_v28 = vrot.slane %v416_v17, 2 }
  0x9c   : > { %v424_v8 = vld [vmem:[#allocation3 + $0x18] sm:$0xff]  ;;  %v439_v12 = vsel %vm260_vm1, %v423_v7, 0.0  ;;  %v427_v23 = vadd.f32 %v426_v16, %v425_v10  ;;  %v434_v25 = vadd.f32 %v433_v18, %v432_v11  ;;  %v397_v30 = vadd.f32 %v396_v21, %v395_v13 }
  0x9d   : > { %v440_v19 = vrot.slane %v439_v12, 4  ;;  %v446_v20 = vsel %vm260_vm1, %v424_v8, 0.0  ;;  %v404_v34 = vadd.f32 %v403_v22, %v402_v14  ;;  %v411_v36 = vadd.f32 %v410_v24, %v409_v15 }
  0x9e   : > { %v447_v27 = vrot.slane %v446_v20, 4  ;;  %v428_v29 = vrot.slane %v427_v23, 2  ;;  %v435_v31 = vrot.slane %v434_v25, 2  ;;  %v418_v40 = vadd.f32 %v417_v28, %v416_v17 }
  0x9f   : > { %v441_v26 = vadd.f32 %v440_v19, %v439_v12  ;;  %v398_v42 = vrot.slane %v397_v30, 1  ;;  %v405_v46 = vrot.slane %v404_v34, 1  ;;  %v412_v48 = vrot.slane %v411_v36, 1 }
  0xa0   : > { %v448_v33 = vadd.f32 %v447_v27, %v446_v20  ;;  %v429_v35 = vadd.f32 %v428_v29, %v427_v23  ;;  %v436_v37 = vadd.f32 %v435_v31, %v434_v25  ;;  %v419_v52 = vrot.slane %v418_v40, 1 }
  0xa1   : > { %v442_v32 = vrot.slane %v441_v26, 2  ;;  %v399_v54 = vadd.f32 %v398_v42, %v397_v30  ;;  %v406_v58 = vadd.f32 %v405_v46, %v404_v34  ;;  %v413_v59 = vadd.f32 %v412_v48, %v411_v36 }
  0xa2   : > { %v449_v39 = vrot.slane %v448_v33, 2  ;;  %v430_v41 = vrot.slane %v429_v35, 1  ;;  %v437_v43 = vrot.slane %v436_v37, 1  ;;  %v420_v61 = vadd.f32 %v419_v52, %v418_v40 }
  0xa3   : > { %v443_v38 = vadd.f32 %v442_v32, %v441_v26  ;;  %v461_v62 = vmul.f32 2.0, %v399_v54  ;;  %v462_v63 = vmul.f32 2.0, %v406_v58  ;;  %v463_v0 = vmul.f32 2.0, %v413_v59 }
  0xa4   : > { %v450_v45 = vadd.f32 %v449_v39, %v448_v33  ;;  %v431_v47 = vadd.f32 %v430_v41, %v429_v35  ;;  %v438_v49 = vadd.f32 %v437_v43, %v436_v37  ;;  %v464_v1 = vmul.f32 2.0, %v420_v61 }
  0xa5   : > { %v444_v44 = vrot.slane %v443_v38, 1  ;;  %v465_v2 = vadd.f32 1e-09, %v461_v62  ;;  %v466_v3 = vadd.f32 1e-09, %v462_v63 }
  0xa6   : > { %v451_v51 = vrot.slane %v450_v45, 1  ;;  %v453_v53 = vadd.f32 1e-09, %v431_v47  ;;  %v454_v56 = vadd.f32 1e-09, %v438_v49 }
  0xa7   : > { %v445_v50 = vadd.f32 %v444_v44, %v443_v38  ;;  %v467_v4 = vadd.f32 1e-09, %v463_v0  ;;  %v468_v6 = vadd.f32 1e-09, %v464_v1 }
  0xa8   : > { %v452_v55 = vadd.f32 %v451_v51, %v450_v45  ;;  %712 = vrcp.f32 %v453_v53 }
  0xa9   : > { %v455_v57 = vadd.f32 1e-09, %v445_v50  ;;  %714 = vrcp.f32 %v454_v56 }
  0xaa   : > { %v456_v60 = vadd.f32 1e-09, %v452_v55 }
  0xab   : > { %716 = vrcp.f32 %v455_v57 }
  0xac   : > { %718 = vrcp.f32 %v456_v60 }
  0xb2   : > { %v713_v5 = vpop.eup %712 }
  0xb3   : > { %v715_v7 = vpop.eup %714  ;;  %v469_v8 = vmul.f32 %v713_v5, %v465_v2 }
  0xb4   : > { %v470_v10 = vmul.f32 %v715_v7, %v466_v3 }
  0xb5   : > { %v717_v9 = vpop.eup %716  ;;  %v473_v13 = vsub.f32 1.0, %v469_v8 }
  0xb6   : > { %v719_v11 = vpop.eup %718  ;;  %v471_v12 = vmul.f32 %v717_v9, %v467_v4  ;;  %v474_v15 = vsub.f32 1.0, %v470_v10 }
  0xb7   : > { %v472_v14 = vmul.f32 %v719_v11, %v468_v6 }
  0xb8   : > { %v475_v16 = vsub.f32 1.0, %v471_v12  ;;  %v482_v18 = vsel %vm481_vm10, %v474_v15, %v473_v13 }
  0xb9   : > { %v476_v17 = vsub.f32 1.0, %v472_v14 }
  0xba   : > { %v484_v19 = vsel %vm483_vm11, %v475_v16, %v482_v18 }
  0xbb   : > { %v486_v20 = vsel %vm485_vm12, %v476_v17, %v484_v19 }
  0xbc   : > { %489 = vst.msk [vmem:[#allocation9] sm:$0xf] %vm488_vm13, %v486_v20 }
  0xbd PF: > { %p1135_p4 = scmp.eq.s32.totalorder %s594_s15, 1  ;;  %s873_s20 = smov [#allocation9]  }
  0xbe   : > { %s499_s28 = sshll.u32 %s873_s20, 4  ;;  %s500_s28 = int_to_ptr.vmem [resolvable:$true] %s499_s28 }
  0xbf   : > { %s780_s6 = scalar_lea.vmem %s500_s28, 64  ;;  %p787_p13 = scmp.lt.s32.totalorder %s500_s28, %s500_s28 }
  0xc0   : > { %p781_p8 = scmp.ne.s32.totalorder %s500_s28, %s780_s6  ;;  %p788_p3 = scmp.lt.s32.totalorder %s780_s6, %s780_s6 }
  0xc2   : > { %p782_p1 = pnand %p781_p8, %p1135_p4  ;;  %p789_p5 = por %p788_p3, %p787_p13 }
  0xc4   : > { %p783_p2 = pneg %p782_p1 }
  0xc6   : > { %p790_p6 = pnand %p789_p5, %p783_p2 }
  0xc8   : > { %793 = shalt.err (!%p790_p6)
}
  0xc9   : > { %s794_s15 = scalar_lea.hbm %s1181_s2, 64 }
  0xca   : > { %p795_p10 = scmp.ne.s32.totalorder %s1181_s2, %s794_s15  ;;  %p800_p7 = scmp.lt.u32.totalorder %s794_s15, %s1181_s2 }
  0xcc   : > { %p796_p12 = pnand %p795_p10, %p1135_p4 }
  0xce   : > { %p797_p0 = pneg %p796_p12 }
  0xd0   : > { %p802_p9 = pnand %p800_p7, %p797_p0 }
  0xd2   : > { %805 = shalt.err (!%p802_p9)
}
  0xd3   : > { %625 = dma.vmem_to_hbm [thread:$0]  (%p1135_p4), %s500_s28, 64, %s1181_s2, [#allocation6]  }
  0xd4   : > { %839 = dma.done.wait (%p1135_p4), [#allocation6], 64  }
  0xd5   : > { %841 = vsyncadd (%p1135_p4), [#allocation6], 4294967232 }
  0xd6 PF: > { %s19_s14 = sadd.s32 1, %s864_s14   ;;  %s1189_s9 = smov %s848_s10 }
  0xd7   : > { %p16_p11 = scmp.ge.s32.totalorder %s19_s14, 4   ;;  %s1190_s10 = smov %s852_s11 }
  0xd8   : > { %s1191_s11 = smov %s940_s21  ;;  %s1192_s12 = smov %s860_s13 }
  0xd9   : > { %s1193_s13 = smov %s1195_s16  ;;  %18 = sbr.rel (!%p16_p11) target bundleno = 7 (0x7), region = 87 }
  0xe0   :  { %512 = vsyncpa [#allocation5], 1 }
  0xe1   :  { %514 = vsyncpa [#allocation5 + $0x1], 1 }
  0xe2   :  { %515 = vsyncpa [#allocation8], 1 }
  0xe3   :  { %517 = vsyncpa [#allocation8 + $0x1], 1 }
  0xe4   :  { %518 = vsyncpa [#allocation6], 1 }
  0xe5   :  { %520 = vsyncpa [#allocation6 + $0x1], 1 }

</bundles_post_ra>
